<compile_context>
chip_gen: v7x
topology: tpu7x:2x2x1
jax: 0.10.0
libtpu: 0.0.40
codegen_flags: <defaults>
</compile_context>

<pallas_src>
import functools

import jax
import jax.numpy as jnp
from jax.experimental import pallas as pl
from jax.experimental.pallas import tpu as pltpu


# ---------------------------------------------------------------------------
# Helpers
# ---------------------------------------------------------------------------
def _round_up(x, m):
    return (x + m - 1) // m * m


def _vocab_tiling(vocab_size, tn):
    """Shared vocab tiling so parameter prep and the kernel wrapper agree."""
    v_min = _round_up(vocab_size, 128)
    tn_eff = min(_round_up(tn, 128), v_min)
    v_p = _round_up(vocab_size, tn_eff)
    return tn_eff, v_p


def prepare_mlm_params(w, b, *, tn=2048):
    """One-time MLM parameter prep (hoisted out of the per-step forward).

    w: [H, V] float32 (PyTorch nn.Linear weight transposed), b: [V] float32.
    Returns (w_p [H, v_p] bf16, b_p [1, v_p] f32). Padded vocab columns get a
    huge negative bias so they never influence the max / sum-exp.
    """
    H, V = w.shape
    _, v_p = _vocab_tiling(V, tn)
    w_p = jnp.zeros((H, v_p), jnp.bfloat16).at[:, :V].set(w.astype(jnp.bfloat16))
    b_p = jnp.full((1, v_p), -1e30, jnp.float32).at[0, :V].set(b)
    return w_p, b_p


# ---------------------------------------------------------------------------
# Pallas kernel: MLM head (single matmul pass + cached-logits log-softmax)
# ---------------------------------------------------------------------------
def _make_mlm_kernel(tn, weight_resident):
    def kernel(x_ref, w_ref, b_ref, o_ref, m_ref, l_ref, logits_ref):
        # x_ref     : (TM, H)   bf16  -- resident across (phase, vocab tile)
        # w_ref     : (H, TN)   bf16  streamed per vocab tile   (streaming mode)
        #             (H, V_p)  bf16  resident for whole kernel (resident mode)
        # b_ref     : (1, TN)   f32
        # o_ref     : (TM, TN)  out dtype -- written only on phase 1
        # m_ref/l_ref: (TM, 1)  f32 running max / sum-exp for current row tile
        # logits_ref: (TM, V_p) cache dtype -- per-row-tile logits cache
        p = pl.program_id(1)     # 0 = matmul + LSE phase, 1 = normalize/write
        j = pl.program_id(2)     # vocab tile index
        col0 = pl.multiple_of(j * tn, tn)

        @pl.when(jnp.logical_and(p == 0, j == 0))
        def _init():
            m_ref[...] = jnp.full_like(m_ref, -jnp.inf)
            l_ref[...] = jnp.zeros_like(l_ref)

        @pl.when(p == 0)
        def _matmul_and_accumulate():
            if weight_resident:
                w_tile = w_ref[:, pl.ds(col0, tn)]
            else:
                w_tile = w_ref[...]
            # MXU matmul (bf16 inputs, f32 accumulation); max/sum/exp ride the
            # VPU/XLU/EUP slots under MXU slack.
            logits = jnp.dot(x_ref[...], w_tile,
                             preferred_element_type=jnp.float32) + b_ref[...]
            logits_ref[:, pl.ds(col0, tn)] = logits.astype(logits_ref.dtype)
            m_prev = m_ref[...]
            m_new = jnp.maximum(m_prev, jnp.max(logits, axis=-1, keepdims=True))
            l_ref[...] = (l_ref[...] * jnp.exp(m_prev - m_new)
                          + jnp.sum(jnp.exp(logits - m_new), axis=-1,
                                    keepdims=True))
            m_ref[...] = m_new

        @pl.when(p == 1)
        def _normalize_and_write():
            lse = m_ref[...] + jnp.log(l_ref[...])
            cached = logits_ref[:, pl.ds(col0, tn)].astype(jnp.float32)
            o_ref[...] = (cached - lse).astype(o_ref.dtype)

    return kernel


# ---------------------------------------------------------------------------
# Wrappers
# ---------------------------------------------------------------------------
def masked_language_model(hidden_states, w_p, b_p, vocab_size, *,
                          tm=512, tn=2048,
                          weight_resident=False,
                          cache_dtype=jnp.bfloat16,
                          out_dtype=jnp.float32,
                          vmem_limit_bytes=None):
    """hidden_states: [B, S, H] f32; w_p/b_p from prepare_mlm_params.

    Returns [B, S, vocab_size] log-probs.

    tm / tn are row / vocab tile sizes (tm=512 so per-step MXU time covers the
    weight-tile DMA at production shapes; both clamped for small problems).
    weight_resident=True holds the whole bf16 [H, V_p] weight in VMEM — use on
    v5e/v6e (128 MiB VMEM); keep False on v7x (64 MiB per TC).
    out_dtype=jnp.bfloat16 halves the [rows, V] HBM write once weight traffic
    is no longer the roofline.
    """
    B, S, H = hidden_states.shape
    tn_eff, v_p = _vocab_tiling(vocab_size, tn)
    assert w_p.shape == (H, v_p) and b_p.shape == (1, v_p), (
        "w_p/b_p must come from prepare_mlm_params with the same tn")

    rows = B * S
    tm_eff = min(tm, _round_up(rows, 8))
    rows_p = _round_up(rows, tm_eff)
    n_row_tiles = rows_p // tm_eff          # NOTE: keep >=2 and even on v7x
    n_v_tiles = v_p // tn_eff               # so megacore splits row tiles evenly.

    if vmem_limit_bytes is None:
        # Stay well under v7x's 64 MiB physical per-TC VMEM in streaming mode;
        # the resident-weight mode is intended for v5e/v6e (128 MiB).
        vmem_limit_bytes = (100 << 20) if weight_resident else (56 << 20)

    # Hot-path activation prep only (weight/bias prep is hoisted out).
    x2d = hidden_states.reshape(rows, H).astype(jnp.bfloat16)
    if rows_p != rows:
        x2d = jnp.pad(x2d, ((0, rows_p - rows), (0, 0)))

    out_bytes = jnp.dtype(out_dtype).itemsize
    weight_reads = 1 if weight_resident else n_row_tiles
    cost = pl.CostEstimate(
        flops=2 * rows_p * H * v_p,                      # single matmul pass
        transcendentals=rows_p * v_p,                    # exp in phase 0
        bytes_accessed=(rows_p * H * 2                   # bf16 activations
                        + weight_reads * H * v_p * 2     # bf16 weights
                        + rows_p * v_p * out_bytes),     # output log-probs
    )

    if weight_resident:
        w_spec = pl.BlockSpec((H, v_p), lambda i, p, j: (0, 0))
    else:
        # During phase 1 the weight isn't used; pin its block index to tile 0
        # so no per-step weight DMA is issued on the normalize pass.
        w_spec = pl.BlockSpec((H, tn_eff), lambda i, p, j: (0, j * (1 - p)))
    b_spec = pl.BlockSpec((1, tn_eff), lambda i, p, j: (0, j * (1 - p)))

    out = pl.pallas_call(
        _make_mlm_kernel(tn_eff, weight_resident),
        out_shape=jax.ShapeDtypeStruct((rows_p, v_p), out_dtype),
        grid_spec=pltpu.PrefetchScalarGridSpec(
            num_scalar_prefetch=0,
            grid=(n_row_tiles, 2, n_v_tiles),
            in_specs=[
                pl.BlockSpec((tm_eff, H), lambda i, p, j: (i, 0)),  # x resident
                w_spec,
                b_spec,
            ],
            # Phase 0 parks the output on block (i, 0) (never written there ->
            # no stale writeback since (i,0) is fully written at p=1, j=0 before
            # the block index next changes); phase 1 walks (i, j).
            out_specs=pl.BlockSpec((tm_eff, tn_eff), lambda i, p, j: (i, p * j)),
            scratch_shapes=[
                pltpu.VMEM((tm_eff, 1), jnp.float32),      # running max
                pltpu.VMEM((tm_eff, 1), jnp.float32),      # running sum-exp
                pltpu.VMEM((tm_eff, v_p), cache_dtype),    # per-row-tile logits
            ],
        ),
        compiler_params=pltpu.CompilerParams(
            # rows parallel (megacore sharding on v7x), phase/vocab sequential.
            dimension_semantics=("parallel", "arbitrary", "arbitrary"),
            vmem_limit_bytes=vmem_limit_bytes,
        ),
        cost_estimate=cost,
    )(x2d, w_p, b_p)

    return out[:rows, :vocab_size].astype(jnp.float32).reshape(B, S, vocab_size)


def next_sentence_prediction(hidden_states, w, b):
    """hidden_states: [B, S, H]; w: [H, 2]; b: [2] -> [B, 2] log-probs.

    Lane-width-2 output makes a dedicated Pallas kernel pathological, so this
    tiny head is intentionally left to plain XLA (per performance review).
    """
    x_cls = hidden_states[:, 0, :]            # x[:, 0] in the PyTorch module
    return jax.nn.log_softmax(x_cls @ w + b, axis=-1)


def bert_stand_in(tokens, segment_label, params):
    """Deterministic stand-in producing BERT hidden states [B, S, H]."""
    tok_emb = params["tok_emb"][tokens]                       # [B, S, H]
    seg_emb = params["seg_emb"][segment_label]                # [B, S, H]
    pos_emb = params["pos_emb"][None, : tokens.shape[1], :]   # [1, S, H]
    return tok_emb + seg_emb + pos_emb


def bert_lm_forward(tokens, segment_label, params, *, tm=512, tn=2048,
                    weight_resident=False):
    x = bert_stand_in(tokens, segment_label, params)
    nsp = next_sentence_prediction(x, params["nsp_w"], params["nsp_b"])
    mlm = masked_language_model(x, params["mlm_w_p"], params["mlm_b_p"],
                                params["vocab_size"], tm=tm, tn=tn,
                                weight_resident=weight_resident)
    return nsp, mlm


# ---------------------------------------------------------------------------
# Main
# ---------------------------------------------------------------------------
if __name__ == "__main__":
    # Small shapes chosen to exercise multiple row tiles, multiple vocab tiles,
    # row padding (48 -> 64) and vocab padding (200 -> 256).
    B, S, H, V = 2, 24, 32, 200
    TM, TN = 32, 128        # toy tiles -> grid (2 row tiles, 2 phases, 2 vocab tiles)

    key = jax.random.PRNGKey(0)
    ks = jax.random.split(key, 8)

    mlm_w = (jax.random.normal(ks[3], (V, H), jnp.float32) * 0.05).T   # [H, V]
    mlm_b = jax.random.normal(ks[4], (V,), jnp.float32) * 0.05
    # One-time parameter prep (padding + bf16 cast hoisted out of the forward).
    mlm_w_p, mlm_b_p = prepare_mlm_params(mlm_w, mlm_b, tn=TN)

    params = {
        # stand-in BERT embeddings
        "tok_emb": jax.random.normal(ks[0], (V, H), jnp.float32) * 0.02,
        "seg_emb": jax.random.normal(ks[1], (3, H), jnp.float32) * 0.02,
        "pos_emb": jax.random.normal(ks[2], (S, H), jnp.float32) * 0.02,
        # MaskedLanguageModel: nn.Linear(hidden, vocab); prepared (padded bf16)
        "mlm_w_p": mlm_w_p,
        "mlm_b_p": mlm_b_p,
        "vocab_size": V,
        # NextSentencePrediction: nn.Linear(hidden, 2) weight [2, H], stored
        # transposed as [H, 2]
        "nsp_w": (jax.random.normal(ks[5], (2, H), jnp.float32) * 0.05).T,
        "nsp_b": jax.random.normal(ks[6], (2,), jnp.float32) * 0.05,
    }

    tokens = jax.random.randint(ks[7], (B, S), 0, V, dtype=jnp.int32)
    segment_label = jnp.concatenate(
        [jnp.ones((B, S // 2), jnp.int32), 2 * jnp.ones((B, S // 2), jnp.int32)],
        axis=1,
    )

    # Streaming-weight path (default; v7x-safe).
    nsp_out, mlm_out = bert_lm_forward(tokens, segment_label, params,
                                       tm=TM, tn=TN, weight_resident=False)
    jax.block_until_ready((nsp_out, mlm_out))

    # Resident-weight path (v5e/v6e option) — exercised at toy size.
    _, mlm_out_res = bert_lm_forward(tokens, segment_label, params,
                                     tm=TM, tn=TN, weight_resident=True)
    jax.block_until_ready(mlm_out_res)

    # Reference in plain JAX (f32).
    x_ref = bert_stand_in(tokens, segment_label, params)
    nsp_ref = jax.nn.log_softmax(
        x_ref[:, 0] @ params["nsp_w"] + params["nsp_b"], axis=-1)
    mlm_ref = jax.nn.log_softmax(x_ref @ mlm_w + mlm_b, axis=-1)

    assert nsp_out.shape == (B, 2) and mlm_out.shape == (B, S, V)
    assert jnp.allclose(nsp_out, nsp_ref, atol=1e-5)
    # bf16 MXU inputs + bf16 logits cache -> slightly looser tolerance.
    assert jnp.allclose(mlm_out, mlm_ref, atol=2e-2)
    assert jnp.allclose(mlm_out_res, mlm_ref, atol=2e-2)

    print("KERNEL_OK")
</pallas_src>

<mosaic_0001>
module attributes {stable_mosaic.version = 11 : i64} {
  func.func @kernel(%arg0: i32, %arg1: i32, %arg2: i32, %arg3: memref<32x32xbf16, #tpu.memory_space<vmem>>, %arg4: memref<32x128xbf16, #tpu.memory_space<vmem>>, %arg5: memref<1x128xf32, #tpu.memory_space<vmem>>, %arg6: memref<32x128xf32, #tpu.memory_space<vmem>>, %arg7: memref<32x1xf32, #tpu.memory_space<vmem>>, %arg8: memref<32x1xf32, #tpu.memory_space<vmem>>, %arg9: memref<32x256xbf16, #tpu.memory_space<vmem>>) attributes {dimension_semantics = [#tpu.dimension_semantics<parallel>, #tpu.dimension_semantics<arbitrary>, #tpu.dimension_semantics<arbitrary>], iteration_bounds = array<i64: 2, 2, 2>, scalar_prefetch = 0 : i64, scratch_operands = 3 : i64, tpu.core_type = #tpu.core_type<tc>, window_params = [{transform_indices = @transform_0, window_bounds = array<i64: 32, 32>}, {transform_indices = @transform_1, window_bounds = array<i64: 32, 128>}, {transform_indices = @transform_2, window_bounds = array<i64: 1, 128>}, {transform_indices = @transform_3, window_bounds = array<i64: 32, 128>}]} {
    %c128_i32 = arith.constant 128 : i32
    %0 = arith.muli %arg2, %c128_i32 : i32
    %1 = tpu.assume_multiple %0, 128 : i32
    %c0_i32 = arith.constant 0 : i32
    %2 = arith.cmpi eq, %arg1, %c0_i32 : i32
    %c0_i32_0 = arith.constant 0 : i32
    %3 = arith.cmpi eq, %arg2, %c0_i32_0 : i32
    %4 = arith.andi %2, %3 : i1
    %5 = arith.extui %4 : i1 to i32
    %c0_i32_1 = arith.constant 0 : i32
    %6 = arith.cmpi ne, %5, %c0_i32_1 : i32
    scf.if %6 {
      %cst = arith.constant 0xFF800000 : f32
      %13 = vector.broadcast %cst : f32 to vector<32x1xf32>
      %c0 = arith.constant 0 : index
      %c0_5 = arith.constant 0 : index
      %14 = vector.load %arg7[%c0, %c0_5] : memref<32x1xf32, #tpu.memory_space<vmem>>, vector<32x1xf32>
      tpu.vector_store %arg7[%c0, %c0_5], %13 {strides = array<i32>} : memref<32x1xf32, #tpu.memory_space<vmem>>, vector<32x1xf32>,
      %cst_6 = arith.constant 0.000000e+00 : f32
      %15 = vector.broadcast %cst_6 : f32 to vector<32x1xf32>
      %c0_7 = arith.constant 0 : index
      %c0_8 = arith.constant 0 : index
      %16 = vector.load %arg8[%c0_7, %c0_8] : memref<32x1xf32, #tpu.memory_space<vmem>>, vector<32x1xf32>
      tpu.vector_store %arg8[%c0_7, %c0_8], %15 {strides = array<i32>} : memref<32x1xf32, #tpu.memory_space<vmem>>, vector<32x1xf32>,
    } else {
    }
    %c0_i32_2 = arith.constant 0 : i32
    %7 = arith.cmpi eq, %arg1, %c0_i32_2 : i32
    %8 = arith.extui %7 : i1 to i32
    %c0_i32_3 = arith.constant 0 : i32
    %9 = arith.cmpi ne, %8, %c0_i32_3 : i32
    scf.if %9 {
      %c0 = arith.constant 0 : index
      %c0_5 = arith.constant 0 : index
      %13 = vector.load %arg4[%c0, %c0_5] : memref<32x128xbf16, #tpu.memory_space<vmem>>, vector<32x128xbf16>
      %c0_6 = arith.constant 0 : index
      %c0_7 = arith.constant 0 : index
      %14 = vector.load %arg3[%c0_6, %c0_7] : memref<32x32xbf16, #tpu.memory_space<vmem>>, vector<32x32xbf16>
      %cst = arith.constant dense<0.000000e+00> : vector<32x128xf32>
      %15 = tpu.matmul %14, %13, %cst {dimension_numbers = #tpu.dot_dimension_numbers<[1], [0], [0], [1], [0, 0, 1, 1], [], []>} : vector<32x32xbf16>, vector<32x128xbf16>, vector<32x128xf32> -> vector<32x128xf32>
      %c0_8 = arith.constant 0 : index
      %c0_9 = arith.constant 0 : index
      %16 = vector.load %arg5[%c0_8, %c0_9] : memref<1x128xf32, #tpu.memory_space<vmem>>, vector<1x128xf32>
      %17 = vector.broadcast %16 : vector<1x128xf32> to vector<32x128xf32>
      %18 = arith.addf %15, %17 : vector<32x128xf32>
      %19 = arith.truncf %18 : vector<32x128xf32> to vector<32x128xbf16>
      %c0_10 = arith.constant 0 : index
      %20 = arith.index_cast %1 : i32 to index
      %21 = vector.load %arg9[%c0_10, %20] : memref<32x256xbf16, #tpu.memory_space<vmem>>, vector<32x128xbf16>
      tpu.vector_store %arg9[%c0_10, %20], %19 {strides = array<i32>} : memref<32x256xbf16, #tpu.memory_space<vmem>>, vector<32x128xbf16>,
      %c0_11 = arith.constant 0 : index
      %c0_12 = arith.constant 0 : index
      %22 = vector.load %arg7[%c0_11, %c0_12] : memref<32x1xf32, #tpu.memory_space<vmem>>, vector<32x1xf32>
      %cst_13 = arith.constant dense<0xFF800000> : vector<32xf32>
      %23 = vector.multi_reduction <maximumf>, %18, %cst_13 [1] : vector<32x128xf32> to vector<32xf32>
      %24 = vector.shape_cast %23 : vector<32xf32> to vector<32x1xf32>
      %25 = arith.maximumf %22, %24 : vector<32x1xf32>
      %c0_14 = arith.constant 0 : index
      %c0_15 = arith.constant 0 : index
      %26 = vector.load %arg8[%c0_14, %c0_15] : memref<32x1xf32, #tpu.memory_space<vmem>>, vector<32x1xf32>
      %27 = arith.subf %22, %25 : vector<32x1xf32>
      %28 = math.exp %27 : vector<32x1xf32>
      %29 = arith.mulf %26, %28 : vector<32x1xf32>
      %30 = vector.broadcast %25 : vector<32x1xf32> to vector<32x128xf32>
      %31 = arith.subf %18, %30 : vector<32x128xf32>
      %32 = math.exp %31 : vector<32x128xf32>
      %cst_16 = arith.constant dense<0.000000e+00> : vector<32xf32>
      %33 = vector.multi_reduction <add>, %32, %cst_16 [1] : vector<32x128xf32> to vector<32xf32>
      %34 = vector.shape_cast %33 : vector<32xf32> to vector<32x1xf32>
      %35 = arith.addf %29, %34 : vector<32x1xf32>
      %c0_17 = arith.constant 0 : index
      %c0_18 = arith.constant 0 : index
      %36 = vector.load %arg8[%c0_17, %c0_18] : memref<32x1xf32, #tpu.memory_space<vmem>>, vector<32x1xf32>
      tpu.vector_store %arg8[%c0_17, %c0_18], %35 {strides = array<i32>} : memref<32x1xf32, #tpu.memory_space<vmem>>, vector<32x1xf32>,
      %c0_19 = arith.constant 0 : index
      %c0_20 = arith.constant 0 : index
      %37 = vector.load %arg7[%c0_19, %c0_20] : memref<32x1xf32, #tpu.memory_space<vmem>>, vector<32x1xf32>
      tpu.vector_store %arg7[%c0_19, %c0_20], %25 {strides = array<i32>} : memref<32x1xf32, #tpu.memory_space<vmem>>, vector<32x1xf32>,
    } else {
    }
    %c1_i32 = arith.constant 1 : i32
    %10 = arith.cmpi eq, %arg1, %c1_i32 : i32
    %11 = arith.extui %10 : i1 to i32
    %c0_i32_4 = arith.constant 0 : i32
    %12 = arith.cmpi ne, %11, %c0_i32_4 : i32
    scf.if %12 {
      %c0 = arith.constant 0 : index
      %c0_5 = arith.constant 0 : index
      %13 = vector.load %arg7[%c0, %c0_5] : memref<32x1xf32, #tpu.memory_space<vmem>>, vector<32x1xf32>
      %c0_6 = arith.constant 0 : index
      %c0_7 = arith.constant 0 : index
      %14 = vector.load %arg8[%c0_6, %c0_7] : memref<32x1xf32, #tpu.memory_space<vmem>>, vector<32x1xf32>
      %15 = math.log %14 : vector<32x1xf32>
      %16 = arith.addf %13, %15 : vector<32x1xf32>
      %c0_8 = arith.constant 0 : index
      %17 = arith.index_cast %1 : i32 to index
      %18 = vector.load %arg9[%c0_8, %17] : memref<32x256xbf16, #tpu.memory_space<vmem>>, vector<32x128xbf16>
      %19 = arith.extf %18 : vector<32x128xbf16> to vector<32x128xf32>
      %20 = vector.broadcast %16 : vector<32x1xf32> to vector<32x128xf32>
      %21 = arith.subf %19, %20 : vector<32x128xf32>
      %c0_9 = arith.constant 0 : index
      %c0_10 = arith.constant 0 : index
      %22 = vector.load %arg6[%c0_9, %c0_10] : memref<32x128xf32, #tpu.memory_space<vmem>>, vector<32x128xf32>
      tpu.vector_store %arg6[%c0_9, %c0_10], %21 {strides = array<i32>} : memref<32x128xf32, #tpu.memory_space<vmem>>, vector<32x128xf32>,
    } else {
    }
    return
  }
  func.func @transform_0(%arg0: i32, %arg1: i32, %arg2: i32) -> (i32, i32) {
    %c0_i32 = arith.constant 0 : i32
    %c0_i32_0 = arith.constant 0 : i32
    return %arg0, %c0_i32 : i32, i32
  }
  func.func @transform_1(%arg0: i32, %arg1: i32, %arg2: i32) -> (i32, i32) {
    %c1_i32 = arith.constant 1 : i32
    %0 = arith.subi %c1_i32, %arg1 : i32
    %1 = arith.muli %arg2, %0 : i32
    %c0_i32 = arith.constant 0 : i32
    %c0_i32_0 = arith.constant 0 : i32
    return %c0_i32, %1 : i32, i32
  }
  func.func @transform_2(%arg0: i32, %arg1: i32, %arg2: i32) -> (i32, i32) {
    %c1_i32 = arith.constant 1 : i32
    %0 = arith.subi %c1_i32, %arg1 : i32
    %1 = arith.muli %arg2, %0 : i32
    %c0_i32 = arith.constant 0 : i32
    %c0_i32_0 = arith.constant 0 : i32
    return %c0_i32, %1 : i32, i32
  }
  func.func @transform_3(%arg0: i32, %arg1: i32, %arg2: i32) -> (i32, i32) {
    %0 = arith.muli %arg1, %arg2 : i32
    %c0_i32 = arith.constant 0 : i32
    return %arg0, %0 : i32, i32
  }
}

</mosaic_0001>

<bundles_post_ra>
// kernel: tpu_custom_call.1
= control target key start
LH: loop header
LB: loop body
LE: loop exit
PB: predicated region body
PF: predicated region fallthrough
CT: control target
= control target key end

     0   :  { %s1292_s0 = inlined_call_operand.vmem [shape: bf16[64,32], index: 0, kind: input, shape index: {}]   ;;  %s1293_s1 = inlined_call_operand.vmem [shape: bf16[32,256], index: 1, kind: input, shape index: {}]   ;;  %s1294_s2 = inlined_call_operand.vmem [shape: f32[1,256], index: 2, kind: input, shape index: {}]   ;;  %s1295_s3 = inlined_call_operand.hbm [shape: f32[64,256], index: 3, kind: output, shape index: {}]  }
   0x1   :  { %1301 = sst [smem:[#allocation12_spill]] %s1293_s1 }
   0x2   :  { %1302 = sst [smem:[#allocation13_spill]] %s1295_s3 }
   0x3   :  { %8 = vsyncpa [#allocation7], 0 }
   0x4   :  { %10 = vsyncpa [#allocation7 + $0x1], 0  ;;  %s1046_s12 = smov 0   ;;  %s1048_s13 = smov 0  }
   0x5   :  { %s1050_s14 = smov 0   ;;  %s1052_s15 = smov 0  }
   0x6   :  { %s1054_s16 = smov 0   ;;  %s1056_s17 = smov 0  }
   0x7   :  { %s1058_s18 = smov 0   ;;  %s1060_s19 = smov 0  }
   0x8   :  { %s1062_s20 = smov 0   ;;  %s1064_s21 = smov 0  }
   0x9   :  { %s1066_s22 = smov 0   ;;  %s1068_s23 = smov 0  }
   0xa LB: > { %1303 = sst [smem:[#allocation9_spill]] %s1004_s20  ;;  %s28_s26 = sadd.s32 1, %s1004_s20  ;;  %s1016_s23 = sphi %s1068_s23, %s16_s23   ;;  %s1012_s22 = sphi %s1066_s22, %s1324_s22   ;;  %s1008_s21 = sphi %s1064_s21, %s1316_s21   ;;  %s1004_s20 = sphi %s1062_s20, %s1323_s20   ;;  %s1000_s19 = sphi %s1060_s19, %s1322_s19   ;;  %s996_s18 = sphi %s1058_s18, %s1315_s18   ;;  %s992_s17 = sphi %s1056_s17, %s1314_s17   ;;  %s988_s16 = sphi %s1054_s16, %s1321_s16   ;;  %s984_s15 = sphi %s1052_s15, %s1320_s15   ;;  %s980_s14 = sphi %s1050_s14, %s1319_s14   ;;  %s976_s13 = sphi %s1048_s13, %s1318_s13   ;;  %s972_s12 = sphi %s1046_s12, %s1317_s12  }
   0xb   : > { %1304 = sst [smem:[#allocation10_spill]] %s1008_s21  ;;  %s31_s27 = sadd.s32 1, %s1008_s21 }
   0xc   : > { %p29_p0 = scmp.ge.s32.totalorder %s28_s26, 2  ;;  %s35_s28 = sadd.s32 1, %s1012_s22 }
   0xd   : > { %s65_s29 = ssub.s32 1, %s1008_s21  ;;  %s72_s30 = sadd.s32 1, %s988_s16 }
   0xe   : > { %s1326_s26 = smov (%p29_p0, %s28_s26), 0  ;;  %s1328_s27 = smov (!%p29_p0, %s31_s27), %s1008_s21 }
   0xf   : > { %s1117_s4 = smul.u32 %s1004_s20, %s65_s29  ;;  %p79_p1 = scmp.ne.s32.totalorder %s988_s16, %s984_s15 }
  0x10   : > { %p33_p2 = scmp.ge.s32.totalorder %s1328_s27, 2  ;;  %p80_p3 = scmp.eq.s32.totalorder %s1016_s23, 0 }
  0x11   : > { %s125_s5 = smul.u32 %s1004_s20, %s1008_s21  ;;  %s132_s6 = sadd.s32 1, %s980_s14 }
  0x12   : > { %s1330_s27 = smov (%p33_p2, %s1328_s27), 0  ;;  %s1332_s28 = smov (!%p33_p2, %s35_s28), %s1012_s22 }
  0x13   : > { %1305 = sst [smem:[#allocation11_spill]] %s1330_s27  ;;  %s67_s7 = ssub.s32 1, %s1330_s27 }
  0x14   : > { %p1129_p4 = por %p80_p3, %p79_p1  ;;  %p37_p5 = scmp.ge.s32.totalorder %s1332_s28, 2 }
  0x15   : > { %s68_s9 = smul.u32 %s67_s7, %s1326_s26  ;;  %p142_p6 = scmp.ne.s32.totalorder %s980_s14, %s976_s13 }
  0x16   : > { %s126_s10 = smul.u32 %s1330_s27, %s1326_s26  ;;  %s1334_s28 = smov (%p37_p5, %s1332_s28), 0 }
  0x17   : > { %s69_s11 = ssub.s32 %s1117_s4, %s68_s9  ;;  %s127_s25 = ssub.s32 %s1012_s22, %s1334_s28 }
  0x18   : > { %s128_s29 = ssub.s32 %s125_s5, %s126_s10  ;;  %p70_p7 = scmp.eq.s32.totalorder %s69_s11, 0 }
  0x19   : > { %s129_s24 = sor.u32 %s128_s29, %s127_s25  ;;  %s1307_s21 = sadd.s32 4294967295, %s1016_s23  }
  0x1a   : > { %p143_p8 = scmp.eq.s32.totalorder %s1307_s21, 7  ;;  %p130_p9 = scmp.eq.s32.totalorder %s129_s24, 0 }
  0x1b   : > { %s1146_s20 = scalar_select %p70_p7, %s988_s16, %s72_s30  }
  0x1c   : > { %p1148_p10 = por %p143_p8, %p142_p6  ;;  %p148_p11 = scmp.ne.s32.totalorder %s976_s13, %s972_s12 }
  0x1d   : > { %s1309_s7 = sadd.s32 4294967294, %s1016_s23   ;;  %p709_p0 = scmp.ge.s32.totalorder %s1016_s23, 8 }
  0x1e   : > { %p149_p12 = scmp.eq.s32.totalorder %s1309_s7, 7 }
  0x1f   : > { %s1157_s27 = scalar_select %p130_p9, %s980_s14, %s132_s6  }
  0x20   : > { %p1159_p13 = por %p149_p12, %p148_p11  ;;  %165 = sbr.rel (%p709_p0) target bundleno = 51 (0x33), region = 16 }
  0x27   : > { %177 = sbr.rel (!%p1129_p4) target bundleno = 51 (0x33), region = 24  ;;  %s179_s21 = sand.u32 (%p1129_p4), 1, %s988_s16  }
  0x28   : > { %s711_s24 = sshll.u32 (%p1129_p4), %s1117_s4, 2  ;;  %s710_s25 = sshll.u32 (%p1129_p4), %s179_s21, 4 }
  0x29   : > { %s1311_s1 = sld [smem:[#allocation12_spill]] (%p1129_p4)  ;;  %s181_s10 = scalar_lea.vmem (%p1129_p4), [#allocation5], %s710_s25 }
  0x2f   : > { %s185_s6 = scalar_lea.vmem %s1311_s1, %s711_s24 }
  0x30   : > { %v201_v0 = vld [vmem:[%s185_s6] sm:$0xf]  ;;  %v203_v1 = vld [vmem:[%s185_s6 + $0x8] sm:$0xf]  ;;  %v205_v2 = vld [vmem:[%s185_s6 + $0x10] sm:$0xf] }
  0x31   : > { %202 = vst [vmem:[%s181_s10] sm:$0xf] %v201_v0  ;;  %204 = vst [vmem:[%s181_s10 + $0x4] sm:$0xf] %v203_v1  ;;  %v207_v3 = vld [vmem:[%s185_s6 + $0x18] sm:$0xf] }
  0x32   : > { %206 = vst [vmem:[%s181_s10 + $0x8] sm:$0xf] %v205_v2  ;;  %208 = vst [vmem:[%s181_s10 + $0xc] sm:$0xf] %v207_v3 }
  0x33 PF: > { %p712_p1 = scmp.ge.s32.totalorder %s1016_s23, 1  ;;  %p248_p2 = scmp.lt.s32.totalorder %s1016_s23, 9 }
  0x35   : > { %p249_p3 = pnand %p712_p1, %p248_p2 }
  0x36   : > { %s255_s4 = sand.u32 (!%p249_p3), 1, %s984_s15   ;;  %s1300_s8 = sand.u32 (!%p249_p3), 1, %s976_s13  }
  0x37   : > { %252 = sbr.rel (%p249_p3) target bundleno = 919 (0x397), region = 69  ;;  %s1175_s11 = sshll.u32 (!%p249_p3), %s255_s4, 4 }
  0x38   : > { %s714_s29 = sshll.u32 (!%p249_p3), %s1300_s8, 5  ;;  %s715_s7 = sshll.u32 (!%p249_p3), %s1000_s19, 2 }
  0x39   : > { %s296_s21 = ssub.s32 (!%p249_p3), 1, %s996_s18  ;;  %p289_p4 = scmp.lt.s32.totalorder (!%p249_p3), %s715_s7, 7 }
  0x3a   : > { %s297_s24 = smul.u32 (!%p249_p3), %s992_s17, %s296_s21  ;;  %s717_s25 = sshll.u32 (!%p249_p3), %s992_s17, 7 }
  0x3b   : > { %p307_p5 = scmp.eq.s32.totalorder (!%p249_p3), %s996_s18, 0  ;;  %p308_p7 = scmp.eq.s32.totalorder (!%p249_p3), %s992_s17, 0 }
  0x3c   : > { %p298_p6 = scmp.lt.s32.totalorder (!%p249_p3), %s297_s24, 1  ;;  %s257_s1 = scalar_lea.vmem (!%p249_p3), [#allocation5], %s1175_s11 }
  0x3d   : > { %p309_p8 = pnand (!%p249_p3), %p308_p7, %p307_p5  ;;  %s1195_s21 = scalar_lea.vmem (!%p249_p3), [#allocation6], %s714_s29 }
  0x3e   : > { %s1336_s7 = smov (!%p289_p4, %s715_s7), 7  ;;  %s1338_s24 = smov (!%p298_p6, %s297_s24), 1 }
  0x3f   : > { %s716_s30 = sshll.u32 %s1336_s7, 2  ;;  %s300_s8 = scalar_lea.vmem %s1294_s2, %s1338_s24  ;;  %vm313_vm0 = vcmask (!%p309_p8), 7168   ;;  %v1018_v4 = vmov (!%p309_p8), -inf   ;;  %v1019_v5 = vmov (!%p309_p8), 0.0  }
  0x40   : > { %s292_s15 = scalar_lea.vmem %s1292_s0, %s716_s30  ;;  %312 = sbr.rel (%p309_p8) target bundleno = 71 (0x47), region = 77  ;;  %314 = vst.msk [vmem:[#allocation2] sm:$0xff] (!%p309_p8), %vm313_vm0, %v1018_v4  ;;  %315 = vst.msk [vmem:[#allocation2 + $0x8] sm:$0xff] (!%p309_p8), %vm313_vm0, %v1018_v4 }
  0x41   : > { %316 = vst.msk [vmem:[#allocation2 + $0x10] sm:$0xff] (!%p309_p8), %vm313_vm0, %v1018_v4  ;;  %317 = vst.msk [vmem:[#allocation2 + $0x18] sm:$0xff] (!%p309_p8), %vm313_vm0, %v1018_v4 }
  0x42   : > { %318 = vst.msk [vmem:[#allocation3] sm:$0xff] (!%p309_p8), %vm313_vm0, %v1019_v5  ;;  %319 = vst.msk [vmem:[#allocation3 + $0x8] sm:$0xff] (!%p309_p8), %vm313_vm0, %v1019_v5 }
  0x43   : > { %320 = vst.msk [vmem:[#allocation3 + $0x10] sm:$0xff] (!%p309_p8), %vm313_vm0, %v1019_v5  ;;  %321 = vst.msk [vmem:[#allocation3 + $0x18] sm:$0xff] (!%p309_p8), %vm313_vm0, %v1019_v5 }
  0x47 PF: > { %p718_p9 = scmp.ne.s32.totalorder %s996_s18, 0 }
  0x48   : > { %v860_v6 = vld [vmem:[%s257_s1] sm:$0xff] (!%p718_p9)   ;;  %v861_v7 = vld [vmem:[%s257_s1 + $0x8] sm:$0xff] (!%p718_p9)   ;;  %vm362_vm1 = vcmask (!%p718_p9), 261120   ;;  %s420_s11 = sshra.s32 (!%p718_p9), %s717_s25, 7  ;;  %v1020_v21 = vmov (!%p718_p9), 0   ;;  %vm506_vm2 = vcmask (!%p718_p9), 7168  }
  0x49   : > { %324 = sbr.rel (%p718_p9) target bundleno = 736 (0x2e0), region = 81  ;;  %740 = vmatprep.subr.bf16.mxu0 (!%p718_p9), %v860_v6  ;;  %v862_v8 = vld [vmem:[%s292_s15] sm:$0xff] (!%p718_p9)   ;;  %v863_v9 = vld [vmem:[%s292_s15 + $0x8] sm:$0xff] (!%p718_p9)   ;;  %s726_s29 = sshll.u32 (!%p718_p9), %s420_s11, 3  ;;  %859 = vset.pattern.permute.xlu1 (!%p718_p9), %v1020_v21  ;;  %v428_v22 = vld [vmem:[#allocation2 + $0x10] sm:$0xff] (!%p718_p9) }
  0x4a   : > { %741 = vmatpush3.bf16.msra.mxu0 (!%p718_p9), %v860_v6  ;;  %744 = vmatprep.mubr.msk.bf16.mxu0 (!%p718_p9), %vm362_vm1, %v862_v8  ;;  %v719_v10 = vld [vmem:[%s300_s8] ss:$0 sm:$0xff] (!%p718_p9)  ;;  %s423_s1 = scalar_lea.vmem (!%p718_p9), [#allocation4], %s726_s29  ;;  %v429_v28 = vld [vmem:[#allocation2 + $0x18] sm:$0xff] (!%p718_p9)  ;;  %v427_v30 = vld [vmem:[#allocation2 + $0x8] sm:$0xff] (!%p718_p9) }
  0x4b   : > { %742 = vmatprep.subr.bf16.mxu0 (!%p718_p9), %v861_v7  ;;  %858 = vset.pattern.permute.xlu0 (!%p718_p9), %v1020_v21  ;;  %v426_v23 = vld [vmem:[#allocation2] sm:$0xff] (!%p718_p9)  ;;  %v444_v0 = vld [vmem:[#allocation3 + $0x10] sm:$0xff] (!%p718_p9)  ;;  %v443_v1 = vld [vmem:[#allocation3 + $0x8] sm:$0xff] (!%p718_p9) }
  0x4c   : > { %v442_v59 = vld [vmem:[#allocation3] sm:$0xff] (!%p718_p9)  ;;  %v445_v8 = vld [vmem:[#allocation3 + $0x18] sm:$0xff] (!%p718_p9) }
  0x4e   : > { %743 = vmatpush3.bf16.msra.mxu0 (!%p718_p9), %v861_v7 }
  0x51   : > { %745 = vmatmul.mubr.msk.bf16.vlgmr.msra.gmra.mrb[0].mxu0 %vm362_vm1, %v863_v9 }
 0x124   : > { %v746_v11 = vpop.f32.mrb[0].mxu0 }
 0x125   : > { %v412_v12 = vadd.f32 %v746_v11, %v719_v10  ;;  %v403_v13 = vpop.f32.mrb[1].mxu0 }
 0x126   : > { %v404_v14 = vadd.f32 %v719_v10, %v403_v13  ;;  %v747_v15 = vpop.f32.mrb[2].mxu0 }
 0x127   : > { %v415_v16 = vadd.f32 %v747_v15, %v719_v10  ;;  %434 = vmax.xlane.f32.xlu1 %v412_v12  ;;  %v406_v17 = vpop.f32.mrb[3].mxu0 }
 0x128   : > { %v407_v18 = vadd.f32 %v719_v10, %v406_v17  ;;  %430 = vmax.xlane.f32.xlu0 %v404_v14 }
 0x129   : > { %v419_v19 = vpack.c.bf16 %v415_v16, %v412_v12 }
 0x12a   : > { %v418_v20 = vpack.c.bf16 %v407_v18, %v404_v14 }
 0x12b   : > { %425 = vst [vmem:[%s423_s1 + $0x10] sm:$0xff] %v419_v19  ;;  %436 = vmax.xlane.f32.xlu1 %v415_v16 }
 0x12c   : > { %424 = vst [vmem:[%s423_s1] sm:$0xff] %v418_v20  ;;  %432 = vmax.xlane.f32.xlu0 %v407_v18 }
 0x1b4   : > { %v435_v24 = vpop.xlane.xlu1 %434 }
 0x1b5   : > { %v440_v25 = vmax.f32 %v428_v22, %v435_v24  ;;  %v431_v26 = vpop.xlane.xlu0 %430 }
 0x1b6   : > { %v438_v27 = vmax.f32 %v426_v23, %v431_v26 }
 0x1b7   : > { %v448_v29 = vsub.f32 %v428_v22, %v440_v25  ;;  %513 = vst.msk [vmem:[#allocation2 + $0x10] sm:$0xff] %vm506_vm2, %v440_v25  ;;  %474 = vperm.xlu1 %859, %v440_v25  }
 0x1b8   : > { %v446_v31 = vsub.f32 %v426_v23, %v438_v27  ;;  %511 = vst.msk [vmem:[#allocation2] sm:$0xff] %vm506_vm2, %v438_v27  ;;  %v437_v32 = vpop.xlane.xlu1 %436  ;;  %464 = vperm.xlu0 %858, %v438_v27  }
 0x1b9   : > { %v441_v33 = vmax.f32 %v429_v28, %v437_v32  ;;  %v433_v34 = vpop.xlane.xlu0 %432  ;;  %v454_v55 = vmul.f32 1.442695, %v448_v29 }
 0x1ba   : > { %v439_v35 = vmax.f32 %v427_v30, %v433_v34  ;;  %v450_v54 = vmul.f32 1.442695, %v446_v31 }
 0x1bb   : > { %v449_v36 = vsub.f32 %v429_v28, %v441_v33  ;;  %514 = vst.msk [vmem:[#allocation2 + $0x18] sm:$0xff] %vm506_vm2, %v441_v33 }
 0x1bc   : > { %v447_v37 = vsub.f32 %v427_v30, %v439_v35  ;;  %512 = vst.msk [vmem:[#allocation2 + $0x8] sm:$0xff] %vm506_vm2, %v439_v35  ;;  %469 = vperm.xlu1 %859, %v439_v35  }
 0x1bd   : > { %v456_v57 = vmul.f32 1.442695, %v449_v36 }
 0x1be   : > { %v452_v56 = vmul.f32 1.442695, %v447_v37 }
 0x1c0   : > { %479 = vperm.xlu1 %859, %v441_v33  }
 0x236   : > { %v475_v38 = vpop.permute.xlu1 %474 }
 0x237   : > { %v484_v39 = vsub.f32 %v412_v12, %v475_v38  ;;  %v465_v40 = vpop.permute.xlu0 %464 }
 0x238   : > { %v482_v41 = vsub.f32 %v404_v14, %v465_v40 }
 0x239   : > { %v490_v43 = vmul.f32 1.442695, %v484_v39 }
 0x23a   : > { %v486_v42 = vmul.f32 1.442695, %v482_v41 }
 0x23b   : > { %v470_v44 = vpop.permute.xlu1 %469 }
 0x23c   : > { %864 = vpow2.f32 %v486_v42  ;;  %v483_v45 = vsub.f32 %v407_v18, %v470_v44 }
 0x23d   : > { %866 = vpow2.f32 %v490_v43 }
 0x23e   : > { %v488_v46 = vmul.f32 1.442695, %v483_v45 }
 0x23f   : > { %v480_v47 = vpop.permute.xlu1 %479 }
 0x240   : > { %868 = vpow2.f32 %v488_v46  ;;  %v485_v48 = vsub.f32 %v415_v16, %v480_v47 }
 0x242   : > { %v492_v49 = vmul.f32 1.442695, %v485_v48 }
 0x244   : > { %870 = vpow2.f32 %v492_v49 }
 0x245   : > { %872 = vpow2.f32 %v450_v54 }
 0x246   : > { %v865_v50 = vpop.eup %864  ;;  %874 = vpow2.f32 %v454_v55 }
 0x247   : > { %494 = vadd.xlane.f32.xlu1 %v865_v50  ;;  %v867_v51 = vpop.eup %866  ;;  %876 = vpow2.f32 %v452_v56 }
 0x248   : > { %878 = vpow2.f32 %v456_v57 }
 0x24a   : > { %v869_v52 = vpop.eup %868 }
 0x24b   : > { %496 = vadd.xlane.f32.xlu0 %v869_v52  ;;  %498 = vadd.xlane.f32.xlu1 %v867_v51 }
 0x24e   : > { %v871_v53 = vpop.eup %870 }
 0x24f   : > { %500 = vadd.xlane.f32.xlu1 %v871_v53  ;;  %v873_v58 = vpop.eup %872 }
 0x250   : > { %v875_v60 = vpop.eup %874  ;;  %v458_v61 = vmul.f32 %v873_v58, %v442_v59 }
 0x251   : > { %v877_v62 = vpop.eup %876  ;;  %v460_v3 = vmul.f32 %v875_v60, %v444_v0 }
 0x252   : > { %v459_v4 = vmul.f32 %v877_v62, %v443_v1  ;;  %v879_v5 = vpop.eup %878 }
 0x253   : > { %v461_v11 = vmul.f32 %v879_v5, %v445_v8 }
 0x2d4   : > { %v495_v63 = vpop.xlane.xlu1 %494 }
 0x2d5   : > { %v502_v2 = vadd.f32 %v495_v63, %v458_v61 }
 0x2d7   : > { %507 = vst.msk [vmem:[#allocation3] sm:$0xff] %vm506_vm2, %v502_v2 }
 0x2d8   : > { %v499_v6 = vpop.xlane.xlu1 %498  ;;  %v497_v7 = vpop.xlane.xlu0 %496 }
 0x2d9   : > { %v504_v9 = vadd.f32 %v499_v6, %v460_v3  ;;  %v503_v10 = vadd.f32 %v497_v7, %v459_v4 }
 0x2db   : > { %509 = vst.msk [vmem:[#allocation3 + $0x10] sm:$0xff] %vm506_vm2, %v504_v9  ;;  %508 = vst.msk [vmem:[#allocation3 + $0x8] sm:$0xff] %vm506_vm2, %v503_v10 }
 0x2dc   : > { %v501_v12 = vpop.xlane.xlu1 %500 }
 0x2dd   : > { %v505_v13 = vadd.f32 %v501_v12, %v461_v11 }
 0x2df   : > { %510 = vst.msk [vmem:[#allocation3 + $0x18] sm:$0xff] %vm506_vm2, %v505_v13 }
 0x2e0 PF: > { %p727_p11 = scmp.ne.s32.totalorder %s996_s18, 1 }
 0x2e1   : > { %v1021_v15 = vmov (!%p727_p11), 0   ;;  %v523_v16 = vld [vmem:[#allocation3] sm:$0xff] (!%p727_p11)  ;;  %v521_v20 = vld [vmem:[#allocation2 + $0x10] sm:$0xff] (!%p727_p11)  ;;  %v522_v26 = vld [vmem:[#allocation2 + $0x18] sm:$0xff] (!%p727_p11)  ;;  %s539_s8 = sshra.s32 (!%p727_p11), %s717_s25, 7 }
 0x2e2   : > { %518 = sbr.rel (%p727_p11) target bundleno = 890 (0x37a), region = 85  ;;  %v525_v14 = vld [vmem:[#allocation3 + $0x10] sm:$0xff] (!%p727_p11)  ;;  %881 = vset.pattern.permute.xlu1 (!%p727_p11), %v1021_v15  ;;  %880 = vset.pattern.permute.xlu0 (!%p727_p11), %v1021_v15  ;;  %v524_v18 = vld [vmem:[#allocation3 + $0x8] sm:$0xff] (!%p727_p11)  ;;  %v519_v23 = vld [vmem:[#allocation2] sm:$0xff] (!%p727_p11)  ;;  %s728_s7 = sshll.u32 (!%p727_p11), %s539_s8, 3 }
 0x2e3   : > { %882 = vlog2.f32 (!%p727_p11), %v525_v14  ;;  %v520_v30 = vld [vmem:[#allocation2 + $0x8] sm:$0xff] (!%p727_p11)  ;;  %s542_s24 = scalar_lea.vmem (!%p727_p11), [#allocation4], %s728_s7 }
 0x2e4   : > { %884 = vlog2.f32 (!%p727_p11), %v523_v16  ;;  %v544_v35 = vld [vmem:[%s542_s24 + $0x10] sm:$0xff] (!%p727_p11)  ;;  %v543_v36 = vld [vmem:[%s542_s24] sm:$0xff] (!%p727_p11) }
 0x2e5   : > { %v547_v37 = vunpack.c.l.bf16 (!%p727_p11), %v544_v35  ;;  %v545_v38 = vunpack.c.l.bf16 (!%p727_p11), %v543_v36  ;;  %v548_v42 = vunpack.c.h.bf16 (!%p727_p11), %v544_v35  ;;  %v546_v44 = vunpack.c.h.bf16 (!%p727_p11), %v543_v36 }
 0x2e6   : > { %v526_v17 = vld [vmem:[#allocation3 + $0x18] sm:$0xff] (!%p727_p11) }
 0x2e7   : > { %886 = vlog2.f32 (!%p727_p11), %v526_v17 }
 0x2e8   : > { %888 = vlog2.f32 (!%p727_p11), %v524_v18 }
 0x2ed   : > { %v883_v19 = vpop.eup %882 }
 0x2ee   : > { %v885_v21 = vpop.eup %884  ;;  %v532_v22 = vmul.f32 0.6931472, %v883_v19 }
 0x2ef   : > { %v528_v25 = vmul.f32 0.6931472, %v885_v21 }
 0x2f0   : > { %v537_v28 = vadd.f32 %v532_v22, %v521_v20 }
 0x2f1   : > { %v887_v24 = vpop.eup %886  ;;  %v535_v31 = vadd.f32 %v528_v25, %v519_v23 }
 0x2f2   : > { %v889_v27 = vpop.eup %888  ;;  %v534_v29 = vmul.f32 0.6931472, %v887_v24  ;;  %561 = vperm.xlu1 %881, %v537_v28  }
 0x2f3   : > { %v530_v32 = vmul.f32 0.6931472, %v889_v27  ;;  %551 = vperm.xlu0 %880, %v535_v31  }
 0x2f4   : > { %v538_v33 = vadd.f32 %v534_v29, %v522_v26 }
 0x2f5   : > { %v536_v34 = vadd.f32 %v530_v32, %v520_v30 }
 0x2f6   : > { %566 = vperm.xlu1 %881, %v538_v33  }
 0x2f7   : > { %556 = vperm.xlu0 %880, %v536_v34  }
 0x371   : > { %v562_v39 = vpop.permute.xlu1 %561 }
 0x372   : > { %v571_v40 = vsub.f32 %v547_v37, %v562_v39  ;;  %v552_v41 = vpop.permute.xlu0 %551 }
 0x373   : > { %v569_v43 = vsub.f32 %v545_v38, %v552_v41 }
 0x374   : > { %575 = vst [vmem:[%s1195_s21 + $0x10] sm:$0xff] %v571_v40 }
 0x375   : > { %573 = vst [vmem:[%s1195_s21] sm:$0xff] %v569_v43  ;;  %v567_v45 = vpop.permute.xlu1 %566 }
 0x376   : > { %v572_v46 = vsub.f32 %v548_v42, %v567_v45  ;;  %v557_v47 = vpop.permute.xlu0 %556 }
 0x377   : > { %v570_v48 = vsub.f32 %v546_v44, %v557_v47 }
 0x378   : > { %576 = vst [vmem:[%s1195_s21 + $0x18] sm:$0xff] %v572_v46 }
 0x379   : > { %574 = vst [vmem:[%s1195_s21 + $0x8] sm:$0xff] %v570_v48 }
 0x37a PF: > { %s585_s25 = smul.u32 %s992_s17, %s996_s18  ;;  %s735_s30 = sshll.u32 %s1000_s19, 3 }
 0x37b   : > { %s594_s5 = sshll.u32 %s1195_s21, 4  ;;  %s1312_s11 = sld [smem:[#allocation13_spill]]  ;;  %s1219_s5 = int_to_ptr.vmem [resolvable:$true] %s594_s5 }
 0x37c   : > { %s591_s6 = sadd.s32 %s735_s30, %s585_s25  ;;  %s1313_s1 = sand.u32 1, %s976_s13  }
 0x37d   : > { %s732_s15 = sshll.u32 %s591_s6, 7  ;;  %s1228_s8 = scalar_lea.sflag [#allocation7], %s1313_s1 }
 0x37e   : > { %s890_s7 = scalar_lea.vmem %s1219_s5, 512  ;;  %s1022_s17 = smov [#allocation6]  }
 0x37f   : > { %p891_p12 = scmp.ne.s32.totalorder %s1219_s5, %s890_s7  ;;  %s894_s18 = sshll.u32 %s1022_s17, 4  ;;  %s895_s18 = int_to_ptr.vmem [resolvable:$false] %s894_s18 }
 0x380   : > { %s896_s19 = scalar_lea.vmem %s895_s18, 1024  ;;  %p897_p2 = scmp.lt.s32.totalorder %s1219_s5, %s895_s18 }
 0x381   : > { %s1224_s29 = scalar_lea.hbm %s1312_s11, %s732_s15  ;;  %p892_p0 = pnand %p891_p12, %p1148_p10 }
 0x382   : > { %p898_p3 = scmp.lt.s32.totalorder %s896_s19, %s890_s7 }
 0x383   : > { %p893_p1 = pneg %p892_p0 }
 0x384   : > { %p899_p4 = por %p898_p3, %p897_p2 }
 0x386   : > { %p900_p5 = pnand %p899_p4, %p893_p1 }
 0x388   : > { %903 = shalt.err (!%p900_p5)
}
 0x389   : > { %s904_s21 = scalar_lea.hbm %s1224_s29, 512  ;;  %s908_s30 = scalar_lea.hbm %s1312_s11, 2048 }
 0x38a   : > { %p905_p6 = scmp.ne.s32.totalorder %s1224_s29, %s904_s21  ;;  %p909_p9 = scmp.lt.u32.totalorder %s1224_s29, %s1312_s11 }
 0x38b   : > { %p910_p11 = scmp.lt.u32.totalorder %s908_s30, %s904_s21  ;;  %p912_p0 = scmp.lt.u32.totalorder %s904_s21, %s1224_s29 }
 0x38c   : > { %p906_p7 = pnand %p905_p6, %p1148_p10 }
 0x38d   : > { %p911_p12 = por %p910_p11, %p909_p9 }
 0x38e   : > { %p907_p8 = pneg %p906_p7 }
 0x38f   : > { %p913_p1 = por %p912_p0, %p911_p12 }
 0x391   : > { %p914_p2 = pnand %p913_p1, %p907_p8 }
 0x393   : > { %917 = shalt.err (!%p914_p2)
}
 0x394   : > { %s1023_s10 = smov 128   ;;  %s1024_s4 = smov 256  }
 0x395   : > { %s1025_s1 = smov 8  }
 0x396   : > { %748 = dma.vmem_to_hbm [thread:$0]  (%p1148_p10), %s1219_s5, 512, %s1224_s29, %s1228_s8, %s1023_s10, %s1024_s4, %s1025_s1  }
 0x397 PF: > { %p754_p3 = scmp.ge.s32.totalorder %s1016_s23, 2  ;;  %s609_s7 = sand.u32 1, %s972_s12  }
 0x398   : > { %s610_s17 = scalar_lea.sflag [#allocation7], %s609_s7 }
 0x399   : > { %p751_p4 = pnand %p754_p3, %p1159_p13 }
 0x39b   : > { %967 = dma.done.wait (!%p751_p4), %s610_s17, 512  }
 0x39c   : > { %969 = vsyncadd (!%p751_p4), %s610_s17, 4294966784  ;;  %s16_s23 = sadd.s32 1, %s1016_s23   ;;  %s1314_s17 = sld [smem:[#allocation9_spill]] }
 0x39d   : > { %p13_p5 = scmp.ge.s32.totalorder %s16_s23, 10   ;;  %s1315_s18 = sld [smem:[#allocation10_spill]] }
 0x39e   : > { %s1316_s21 = sld [smem:[#allocation11_spill]]  ;;  %s1317_s12 = smov %s976_s13 }
 0x39f   : > { %s1318_s13 = smov %s980_s14  ;;  %s1319_s14 = smov %s1157_s27 }
 0x3a0   : > { %s1320_s15 = smov %s988_s16  ;;  %s1321_s16 = smov %s1146_s20 }
 0x3a1   : > { %s1322_s19 = smov %s1012_s22  ;;  %s1323_s20 = smov %s1326_s26 }
 0x3a2   : > { %s1324_s22 = smov %s1334_s28  ;;  %15 = sbr.rel (!%p13_p5) target bundleno = 10 (0xa), region = 133 }
 0x3a9   :  { %615 = vsyncpa [#allocation7], 1 }
 0x3aa   :  { %617 = vsyncpa [#allocation7 + $0x1], 1 }

</bundles_post_ra>
